<compile_context>
chip_gen: v7x
topology: tpu7x:2x2x1
jax: 0.10.0
libtpu: 0.0.40
codegen_flags: <defaults>
</compile_context>

<pallas_src>
import functools

import jax
import jax.numpy as jnp
from jax.experimental import pallas as pl
from jax.experimental.pallas import tpu as pltpu


def _recall_ce_kernel(x_ref, t_ref, gt_ref, fn_ref, ce_ref, *, ignore_index, hw, masked):
    # x_ref : (1, C, TP) logits block (class on sublanes, pixels on lanes)
    # t_ref : (1, 1, TP) int32 targets
    # gt_ref / fn_ref / ce_ref : (1, C, 1) per-batch accumulators (VMEM-resident across axis 1)
    i = pl.program_id(1)

    @pl.when(i == 0)
    def _():
        gt_ref[...] = jnp.zeros_like(gt_ref)
        fn_ref[...] = jnp.zeros_like(fn_ref)
        ce_ref[...] = jnp.zeros_like(ce_ref)

    x = x_ref[0].astype(jnp.float32)                    # (C, TP), math in f32
    t = t_ref[0]                                        # (1, TP) int32
    n_cls, tp = x.shape

    class_ids = jax.lax.broadcasted_iota(jnp.int32, (n_cls, 1), 0)   # (C, 1)
    onehot = t == class_ids                                          # (C, TP) bool
    not_ignored = t != ignore_index                                  # (1, TP) bool

    if masked:
        # valid-pixel mask: guards the partial last tile (reads past H*W are garbage)
        lane_ids = jax.lax.broadcasted_iota(jnp.int32, (1, tp), 1)
        valid = (i * tp + lane_ids) < hw                             # (1, TP) bool
        onehot = onehot & valid
        not_ignored = not_ignored & valid

    # numerically stable log-softmax cross entropy, class axis = sublanes
    m = jnp.max(x, axis=0, keepdims=True)                            # (1, TP)
    z = x - m
    lse = jnp.log(jnp.sum(jnp.exp(z), axis=0, keepdims=True))        # (1, TP)
    z_t = jnp.sum(jnp.where(onehot, z, 0.0), axis=0, keepdims=True)  # (1, TP)
    ce = jnp.where(not_ignored, lse - z_t, 0.0)                      # (1, TP)

    # argmax prediction = lowest class index attaining the row max (matches jnp.argmax)
    pred = jnp.min(jnp.where(x == m, class_ids, n_cls), axis=0, keepdims=True)
    mis = (pred != t).astype(jnp.float32)                            # (1, TP)

    onehot_f = onehot.astype(jnp.float32)                            # (C, TP)
    gt_ref[...] += jnp.sum(onehot_f, axis=1, keepdims=True)[None]        # (1, C, 1)
    fn_ref[...] += jnp.sum(onehot_f * mis, axis=1, keepdims=True)[None]  # (1, C, 1)
    ce_ref[...] += jnp.sum(onehot_f * ce, axis=1, keepdims=True)[None]   # (1, C, 1)


def _unique_scatter_counter(count_full):
    # Emulates (with fixed-size per-class counts) the torch.unique/scatter fixup:
    #   counter = ones(C); idx, cnt = torch.unique(values, return_counts=True)
    #   cnt[idx == 0] = cnt[1]; idx[idx == 0] = 1; counter[idx] = cnt.float()
    # (The torch code hard-codes ignore_index == 0 semantics; same here.)
    counter = jnp.where(count_full > 0, count_full, 1.0)
    present_nz = count_full[1:] > 0
    c2 = 1 + jnp.argmax(present_nz)              # smallest present class > 0 (2nd unique value)
    count_c2 = jnp.maximum(count_full[c2], 1.0)  # guard degenerate "only class 0 present" case
    counter_ig = counter.at[0].set(1.0).at[1].set(count_c2)
    return jnp.where(count_full[0] > 0, counter_ig, counter)


def _pick_tile(hw, c, requested=None):
    if hw <= 128:
        return hw
    hw_up = ((hw + 127) // 128) * 128
    if requested is None:
        # ~1 MiB of f32 logits per block (pipeline double-buffers it), multiple of 128 lanes
        requested = max(512, (1 << 20) // (4 * c))
    t = min(requested, hw_up)
    return max(128, (t // 128) * 128)


def recall_cross_entropy(logits_nchw, target_nhw, *, n_classes=19, ignore_index=0, tile=None):
    n, c, h, w = logits_nchw.shape
    assert c == n_classes
    hw = h * w

    # NCHW-native: reshape only (no transpose, no pad -> no extra HBM copies of the logits).
    x = logits_nchw.reshape(n, c, hw)                 # dtype passed through; kernel casts to f32
    t = target_nhw.reshape(n, 1, hw).astype(jnp.int32)

    tile_p = _pick_tile(hw, c, tile)
    num_tiles = pl.cdiv(hw, tile_p)
    masked = (num_tiles * tile_p) != hw               # static: partial-tile mask compiled out if even

    kernel = functools.partial(_recall_ce_kernel,
                               ignore_index=ignore_index, hw=hw, masked=masked)

    cost = pl.CostEstimate(
        flops=int(10 * n * hw * c),
        transcendentals=int(n * hw * (c + 1)),
        bytes_accessed=int(n * c * hw * logits_nchw.dtype.itemsize + n * hw * 4 + 3 * n * c * 4),
    )

    gt_nc, fn_nc, ce_nc = pl.pallas_call(
        kernel,
        out_shape=(jax.ShapeDtypeStruct((n, c, 1), jnp.float32),
                   jax.ShapeDtypeStruct((n, c, 1), jnp.float32),
                   jax.ShapeDtypeStruct((n, c, 1), jnp.float32)),
        grid_spec=pltpu.PrefetchScalarGridSpec(
            num_scalar_prefetch=0,
            grid=(n, num_tiles),
            in_specs=[pl.BlockSpec((1, c, tile_p), lambda b, i: (b, 0, i)),
                      pl.BlockSpec((1, 1, tile_p), lambda b, i: (b, 0, i))],
            out_specs=(pl.BlockSpec((1, c, 1), lambda b, i: (b, 0, 0)),
                       pl.BlockSpec((1, c, 1), lambda b, i: (b, 0, 0)),
                       pl.BlockSpec((1, c, 1), lambda b, i: (b, 0, 0)))),
        compiler_params=pltpu.CompilerParams(
            dimension_semantics=("parallel", "arbitrary")),
        cost_estimate=cost,
    )(x, t)

    gt_count = jnp.sum(gt_nc[:, :, 0], axis=0)        # (C,)
    fn_count = jnp.sum(fn_nc[:, :, 0], axis=0)        # (C,)
    ce_sum = jnp.sum(ce_nc[:, :, 0], axis=0)          # (C,)  sum of CE per target class

    # TODO(synk): torch.unique returns data-dependent-sized tensors; emulated here with
    # fixed-size per-class histograms + a vectorized scatter fixup on tiny C-vectors.
    weight = _unique_scatter_counter(fn_count) / _unique_scatter_counter(gt_count)

    # loss.mean() == sum_p weight[t_p]*CE_p / P == sum_c weight[c]*ce_sum[c] / P
    return jnp.sum(weight * ce_sum) / (n * hw)


def recall_cross_entropy_ref(logits_nchw, target_nhw, *, n_classes=19, ignore_index=0):
    # Pure-JAX reference mirroring the PyTorch forward.
    x = jnp.transpose(logits_nchw, (0, 2, 3, 1)).reshape(-1, n_classes).astype(jnp.float32)
    t = target_nhw.reshape(-1).astype(jnp.int32)
    pred = jnp.argmax(x, axis=-1)
    mis = (pred != t).astype(jnp.float32)
    onehot = jax.nn.one_hot(t, n_classes, dtype=jnp.float32)
    gt_count = jnp.sum(onehot, axis=0)
    fn_count = jnp.sum(onehot * mis[:, None], axis=0)
    weight = _unique_scatter_counter(fn_count) / _unique_scatter_counter(gt_count)
    logp = jax.nn.log_softmax(x, axis=-1)
    ce = -jnp.take_along_axis(logp, t[:, None], axis=-1)[:, 0]
    ce = jnp.where(t == ignore_index, 0.0, ce)
    return jnp.mean(weight[t] * ce)


if __name__ == "__main__":
    key = jax.random.PRNGKey(0)
    k1, k2 = jax.random.split(key)
    n_classes = 19
    logits = jax.random.normal(k1, (2, n_classes, 16, 16), dtype=jnp.float32)    # NCHW
    target = jax.random.randint(k2, (2, 16, 16), 0, n_classes, dtype=jnp.int32)  # NHW

    loss = recall_cross_entropy(logits, target, n_classes=n_classes, ignore_index=0)
    loss = jax.block_until_ready(loss)

    ref = recall_cross_entropy_ref(logits, target, n_classes=n_classes, ignore_index=0)
    assert abs(float(loss) - float(ref)) < 1e-4 * max(1.0, abs(float(ref))), (float(loss), float(ref))
    print("KERNEL_OK")
</pallas_src>

<mosaic_0001>
module attributes {stable_mosaic.version = 11 : i64} {
  func.func @_recall_ce_kernel(%arg0: i32, %arg1: i32, %arg2: memref<1x19x256xf32, #tpu.memory_space<vmem>>, %arg3: memref<1x1x256xi32, #tpu.memory_space<vmem>>, %arg4: memref<1x19x1xf32, #tpu.memory_space<vmem>>, %arg5: memref<1x19x1xf32, #tpu.memory_space<vmem>>, %arg6: memref<1x19x1xf32, #tpu.memory_space<vmem>>) attributes {dimension_semantics = [#tpu.dimension_semantics<parallel>, #tpu.dimension_semantics<arbitrary>], iteration_bounds = array<i64: 2, 1>, scalar_prefetch = 0 : i64, scratch_operands = 0 : i64, tpu.core_type = #tpu.core_type<tc>, window_params = [{transform_indices = @transform_0, window_bounds = array<i64: 1, 19, 256>}, {transform_indices = @transform_1, window_bounds = array<i64: 1, 1, 256>}, {transform_indices = @transform_2, window_bounds = array<i64: 1, 19, 1>}, {transform_indices = @transform_3, window_bounds = array<i64: 1, 19, 1>}, {transform_indices = @transform_4, window_bounds = array<i64: 1, 19, 1>}]} {
    %c0_i32 = arith.constant 0 : i32
    %0 = arith.cmpi eq, %arg1, %c0_i32 : i32
    %1 = arith.extui %0 : i1 to i32
    %c0_i32_0 = arith.constant 0 : i32
    %2 = arith.cmpi ne, %1, %c0_i32_0 : i32
    scf.if %2 {
      %cst_33 = arith.constant 0.000000e+00 : f32
      %63 = vector.broadcast %cst_33 : f32 to vector<1x19x1xf32>
      %c0_34 = arith.constant 0 : index
      %c0_35 = arith.constant 0 : index
      %c0_36 = arith.constant 0 : index
      %64 = vector.load %arg4[%c0_34, %c0_35, %c0_36] : memref<1x19x1xf32, #tpu.memory_space<vmem>>, vector<1x19x1xf32>
      tpu.vector_store %arg4[%c0_34, %c0_35, %c0_36], %63 {strides = array<i32>} : memref<1x19x1xf32, #tpu.memory_space<vmem>>, vector<1x19x1xf32>,
      %cst_37 = arith.constant 0.000000e+00 : f32
      %65 = vector.broadcast %cst_37 : f32 to vector<1x19x1xf32>
      %c0_38 = arith.constant 0 : index
      %c0_39 = arith.constant 0 : index
      %c0_40 = arith.constant 0 : index
      %66 = vector.load %arg5[%c0_38, %c0_39, %c0_40] : memref<1x19x1xf32, #tpu.memory_space<vmem>>, vector<1x19x1xf32>
      tpu.vector_store %arg5[%c0_38, %c0_39, %c0_40], %65 {strides = array<i32>} : memref<1x19x1xf32, #tpu.memory_space<vmem>>, vector<1x19x1xf32>,
      %cst_41 = arith.constant 0.000000e+00 : f32
      %67 = vector.broadcast %cst_41 : f32 to vector<1x19x1xf32>
      %c0_42 = arith.constant 0 : index
      %c0_43 = arith.constant 0 : index
      %c0_44 = arith.constant 0 : index
      %68 = vector.load %arg6[%c0_42, %c0_43, %c0_44] : memref<1x19x1xf32, #tpu.memory_space<vmem>>, vector<1x19x1xf32>
      tpu.vector_store %arg6[%c0_42, %c0_43, %c0_44], %67 {strides = array<i32>} : memref<1x19x1xf32, #tpu.memory_space<vmem>>, vector<1x19x1xf32>,
    } else {
    }
    %c0 = arith.constant 0 : index
    %c0_1 = arith.constant 0 : index
    %c0_2 = arith.constant 0 : index
    %3 = vector.load %arg2[%c0, %c0_1, %c0_2] : memref<1x19x256xf32, #tpu.memory_space<vmem>>, vector<1x19x256xf32>
    %4 = vector.shape_cast %3 : vector<1x19x256xf32> to vector<19x256xf32>
    %c0_3 = arith.constant 0 : index
    %c0_4 = arith.constant 0 : index
    %c0_5 = arith.constant 0 : index
    %5 = vector.load %arg3[%c0_3, %c0_4, %c0_5] : memref<1x1x256xi32, #tpu.memory_space<vmem>>, vector<1x1x256xi32>
    %6 = vector.shape_cast %5 : vector<1x1x256xi32> to vector<1x256xi32>
    %7 = tpu.iota {dimensions = array<i32: 0>} : vector<19x1xi32>
    %8 = vector.broadcast %6 : vector<1x256xi32> to vector<19x256xi32>
    %9 = vector.broadcast %7 : vector<19x1xi32> to vector<19x256xi32>
    %10 = arith.cmpi eq, %8, %9 : vector<19x256xi32>
    %c0_i32_6 = arith.constant 0 : i32
    %11 = vector.broadcast %c0_i32_6 : i32 to vector<1x256xi32>
    %12 = arith.cmpi ne, %6, %11 : vector<1x256xi32>
    %cst = arith.constant dense<0xFF800000> : vector<256xf32>
    %13 = vector.multi_reduction <maximumf>, %4, %cst [0] : vector<19x256xf32> to vector<256xf32>
    %14 = vector.shape_cast %13 : vector<256xf32> to vector<1x256xf32>
    %15 = vector.broadcast %14 : vector<1x256xf32> to vector<19x256xf32>
    %16 = arith.subf %4, %15 : vector<19x256xf32>
    %17 = math.exp %16 : vector<19x256xf32>
    %cst_7 = arith.constant dense<0.000000e+00> : vector<256xf32>
    %18 = vector.multi_reduction <add>, %17, %cst_7 [0] : vector<19x256xf32> to vector<256xf32>
    %19 = vector.shape_cast %18 : vector<256xf32> to vector<1x256xf32>
    %20 = math.log %19 : vector<1x256xf32>
    %cst_8 = arith.constant 0.000000e+00 : f32
    %21 = vector.broadcast %cst_8 : f32 to vector<19x256xf32>
    %22 = arith.select %10, %16, %21 : vector<19x256xi1>, vector<19x256xf32>
    %cst_9 = arith.constant dense<0.000000e+00> : vector<256xf32>
    %23 = vector.multi_reduction <add>, %22, %cst_9 [0] : vector<19x256xf32> to vector<256xf32>
    %24 = vector.shape_cast %23 : vector<256xf32> to vector<1x256xf32>
    %25 = arith.subf %20, %24 : vector<1x256xf32>
    %cst_10 = arith.constant 0.000000e+00 : f32
    %26 = vector.broadcast %cst_10 : f32 to vector<1x256xf32>
    %27 = arith.select %12, %25, %26 : vector<1x256xi1>, vector<1x256xf32>
    %28 = vector.broadcast %14 : vector<1x256xf32> to vector<19x256xf32>
    %29 = arith.cmpf oeq, %4, %28 : vector<19x256xf32>
    %c19_i32 = arith.constant 19 : i32
    %30 = vector.shape_cast %7 : vector<19x1xi32> to vector<19x1xi32>
    %31 = vector.broadcast %30 : vector<19x1xi32> to vector<19x256xi32>
    %32 = vector.broadcast %c19_i32 : i32 to vector<19x256xi32>
    %33 = arith.select %29, %31, %32 : vector<19x256xi1>, vector<19x256xi32>
    %cst_11 = arith.constant dense<2147483647> : vector<256xi32>
    %34 = vector.multi_reduction <minsi>, %33, %cst_11 [0] : vector<19x256xi32> to vector<256xi32>
    %35 = vector.shape_cast %34 : vector<256xi32> to vector<1x256xi32>
    %36 = arith.cmpi ne, %35, %6 : vector<1x256xi32>
    %37 = arith.extui %36 : vector<1x256xi1> to vector<1x256xi32>
    %38 = arith.sitofp %37 : vector<1x256xi32> to vector<1x256xf32>
    %39 = arith.extui %10 : vector<19x256xi1> to vector<19x256xi32>
    %40 = arith.sitofp %39 : vector<19x256xi32> to vector<19x256xf32>
    %c0_12 = arith.constant 0 : index
    %c0_13 = arith.constant 0 : index
    %c0_14 = arith.constant 0 : index
    %41 = vector.load %arg4[%c0_12, %c0_13, %c0_14] : memref<1x19x1xf32, #tpu.memory_space<vmem>>, vector<1x19x1xf32>
    %cst_15 = arith.constant dense<0.000000e+00> : vector<19xf32>
    %42 = vector.multi_reduction <add>, %40, %cst_15 [1] : vector<19x256xf32> to vector<19xf32>
    %43 = vector.shape_cast %42 : vector<19xf32> to vector<19x1xf32>
    %44 = vector.shape_cast %43 : vector<19x1xf32> to vector<1x19x1xf32>
    %45 = arith.addf %41, %44 : vector<1x19x1xf32>
    %c0_16 = arith.constant 0 : index
    %c0_17 = arith.constant 0 : index
    %c0_18 = arith.constant 0 : index
    %46 = vector.load %arg4[%c0_16, %c0_17, %c0_18] : memref<1x19x1xf32, #tpu.memory_space<vmem>>, vector<1x19x1xf32>
    tpu.vector_store %arg4[%c0_16, %c0_17, %c0_18], %45 {strides = array<i32>} : memref<1x19x1xf32, #tpu.memory_space<vmem>>, vector<1x19x1xf32>,
    %c0_19 = arith.constant 0 : index
    %c0_20 = arith.constant 0 : index
    %c0_21 = arith.constant 0 : index
    %47 = vector.load %arg5[%c0_19, %c0_20, %c0_21] : memref<1x19x1xf32, #tpu.memory_space<vmem>>, vector<1x19x1xf32>
    %48 = vector.broadcast %38 : vector<1x256xf32> to vector<19x256xf32>
    %49 = arith.mulf %40, %48 : vector<19x256xf32>
    %cst_22 = arith.constant dense<0.000000e+00> : vector<19xf32>
    %50 = vector.multi_reduction <add>, %49, %cst_22 [1] : vector<19x256xf32> to vector<19xf32>
    %51 = vector.shape_cast %50 : vector<19xf32> to vector<19x1xf32>
    %52 = vector.shape_cast %51 : vector<19x1xf32> to vector<1x19x1xf32>
    %53 = arith.addf %47, %52 : vector<1x19x1xf32>
    %c0_23 = arith.constant 0 : index
    %c0_24 = arith.constant 0 : index
    %c0_25 = arith.constant 0 : index
    %54 = vector.load %arg5[%c0_23, %c0_24, %c0_25] : memref<1x19x1xf32, #tpu.memory_space<vmem>>, vector<1x19x1xf32>
    tpu.vector_store %arg5[%c0_23, %c0_24, %c0_25], %53 {strides = array<i32>} : memref<1x19x1xf32, #tpu.memory_space<vmem>>, vector<1x19x1xf32>,
    %c0_26 = arith.constant 0 : index
    %c0_27 = arith.constant 0 : index
    %c0_28 = arith.constant 0 : index
    %55 = vector.load %arg6[%c0_26, %c0_27, %c0_28] : memref<1x19x1xf32, #tpu.memory_space<vmem>>, vector<1x19x1xf32>
    %56 = vector.broadcast %27 : vector<1x256xf32> to vector<19x256xf32>
    %57 = arith.mulf %40, %56 : vector<19x256xf32>
    %cst_29 = arith.constant dense<0.000000e+00> : vector<19xf32>
    %58 = vector.multi_reduction <add>, %57, %cst_29 [1] : vector<19x256xf32> to vector<19xf32>
    %59 = vector.shape_cast %58 : vector<19xf32> to vector<19x1xf32>
    %60 = vector.shape_cast %59 : vector<19x1xf32> to vector<1x19x1xf32>
    %61 = arith.addf %55, %60 : vector<1x19x1xf32>
    %c0_30 = arith.constant 0 : index
    %c0_31 = arith.constant 0 : index
    %c0_32 = arith.constant 0 : index
    %62 = vector.load %arg6[%c0_30, %c0_31, %c0_32] : memref<1x19x1xf32, #tpu.memory_space<vmem>>, vector<1x19x1xf32>
    tpu.vector_store %arg6[%c0_30, %c0_31, %c0_32], %61 {strides = array<i32>} : memref<1x19x1xf32, #tpu.memory_space<vmem>>, vector<1x19x1xf32>,
    return
  }
  func.func @transform_0(%arg0: i32, %arg1: i32) -> (i32, i32, i32) {
    %c0_i32 = arith.constant 0 : i32
    %c0_i32_0 = arith.constant 0 : i32
    return %arg0, %c0_i32, %arg1 : i32, i32, i32
  }
  func.func @transform_1(%arg0: i32, %arg1: i32) -> (i32, i32, i32) {
    %c0_i32 = arith.constant 0 : i32
    %c0_i32_0 = arith.constant 0 : i32
    return %arg0, %c0_i32, %arg1 : i32, i32, i32
  }
  func.func @transform_2(%arg0: i32, %arg1: i32) -> (i32, i32, i32) {
    %c0_i32 = arith.constant 0 : i32
    %c0_i32_0 = arith.constant 0 : i32
    %c0_i32_1 = arith.constant 0 : i32
    return %arg0, %c0_i32, %c0_i32_0 : i32, i32, i32
  }
  func.func @transform_3(%arg0: i32, %arg1: i32) -> (i32, i32, i32) {
    %c0_i32 = arith.constant 0 : i32
    %c0_i32_0 = arith.constant 0 : i32
    %c0_i32_1 = arith.constant 0 : i32
    return %arg0, %c0_i32, %c0_i32_0 : i32, i32, i32
  }
  func.func @transform_4(%arg0: i32, %arg1: i32) -> (i32, i32, i32) {
    %c0_i32 = arith.constant 0 : i32
    %c0_i32_0 = arith.constant 0 : i32
    %c0_i32_1 = arith.constant 0 : i32
    return %arg0, %c0_i32, %c0_i32_0 : i32, i32, i32
  }
}

</mosaic_0001>

<bundles_post_ra>
// kernel: tpu_custom_call.1
= control target key start
LH: loop header
LB: loop body
LE: loop exit
PB: predicated region body
PF: predicated region fallthrough
CT: control target
= control target key end

     0   :  { %s845_s15 = smov 0   ;;  %s847_s16 = smov 0   ;;  %s1114_s0 = inlined_call_operand.vmem [shape: f32[2,19,256], index: 0, kind: input, shape index: {}]   ;;  %s1115_s1 = inlined_call_operand.vmem [shape: s32[2,1,256], index: 1, kind: input, shape index: {}]   ;;  %s1116_s2 = inlined_call_operand.vmem [shape: f32[2,19,1], index: 2, kind: output, shape index: {0}]   ;;  %s1117_s3 = inlined_call_operand.vmem [shape: f32[2,19,1], index: 3, kind: output, shape index: {1}]   ;;  %s1118_s4 = inlined_call_operand.vmem [shape: f32[2,19,1], index: 4, kind: output, shape index: {2}]  }
   0x1   :  { %s849_s17 = smov 0  }
   0x2 LB: > { %s27_s18 = sadd.s32 1, %s812_s16  ;;  %p734_p0 = scmp.ge.s32.totalorder %s816_s17, 1  ;;  %s816_s17 = sphi %s849_s17, %s15_s17   ;;  %s812_s16 = sphi %s847_s16, %s1120_s16   ;;  %s808_s15 = sphi %s845_s15, %s1119_s15  }
   0x3   : > { %p29_p1 = scmp.ge.s32.totalorder %s27_s18, 2  ;;  %p202_p2 = scmp.lt.s32.totalorder %s816_s17, 3 }
   0x5   : > { %s1122_s18 = smov (%p29_p1, %s27_s18), 0  ;;  %p203_p3 = pnand %p734_p0, %p202_p2 }
   0x6   : > { %p251_p4 = scmp.lt.s32.totalorder (!%p203_p3), %s808_s15, 1  ;;  %v306_v0 = vlaneseq (!%p203_p3)  ;;  %vm288_vm0 = vcmask (!%p203_p3), 7168   ;;  %vm325_vm1 = vcmask (!%p203_p3), 1042432   ;;  %v818_v8 = vmov (!%p203_p3), 0.0  }
   0x7   : > { %206 = sbr.rel (%p203_p3) target bundleno = 251 (0xfb), region = 28 }
   0x8   : > { %v863_v1 = vshrl.u32 (!%p203_p3), %v306_v0, 7 }
   0xa   : > { %v868_v2 = vsub.s32 (!%p203_p3), 0, %v863_v1  ;;  %v316_v3 = vsub.s32 (!%p203_p3), 1, %v863_v1  ;;  %v875_v4 = vadd.s32 (!%p203_p3), 16, %v863_v1  ;;  %v908_v11 = vadd.s32 (!%p203_p3), 8, %v863_v1 }
   0xe   : > { %s1124_s15 = smov (!%p251_p4, %s808_s15), 1 }
   0xf   : > { %s736_s19 = sshll.u32 %s1124_s15, 1  ;;  %s865_s20 = smul.u32 24, %s1124_s15 }
  0x10   : > { %s267_s23 = scalar_lea.vmem %s1115_s1, %s736_s19  ;;  %s750_s24 = smul.u32 48, %s1124_s15 }
  0x11   : > { %v877_v5 = vld [vmem:[%s267_s23] sm:$0x3]  ;;  %s883_s27 = scalar_lea.vmem %s1116_s2, %s865_s20  ;;  %s992_s7 = scalar_lea.vmem %s1117_s3, %s865_s20 }
  0x12   : > { %v887_v6 = vrot.slane %v877_v5, %v868_v2  ;;  %v892_v7 = vrot.slane %v877_v5, %v316_v3  ;;  %s258_s30 = scalar_lea.vmem %s1114_s0, %s750_s24  ;;  %289 = vst.msk [vmem:[%s883_s27] sm:$0xff] %vm288_vm0, %v818_v8  ;;  %290 = vst.msk [vmem:[%s883_s27 + $0x8] sm:$0xff] %vm288_vm0, %v818_v8  ;;  %s1055_s10 = scalar_lea.vmem %s1118_s4, %s865_s20 }
  0x13   : > { %v903_v9 = vld [vmem:[%s258_s30] sm:$0xff]  ;;  %v905_v10 = vld [vmem:[%s258_s30 + $0x8] sm:$0xff]  ;;  %v930_v16 = vld [vmem:[%s258_s30 + $0x10] sm:$0xff]  ;;  %294 = vst.msk [vmem:[%s992_s7 + $0x8] sm:$0xff] %vm288_vm0, %v818_v8 }
  0x14   : > { %vm318_vm2 = vcmp.eq.s32.totalorder %v887_v6, %v863_v1  ;;  %vm319_vm3 = vcmp.eq.s32.totalorder %v892_v7, %v863_v1  ;;  %v303_v12 = vld [vmem:[%s258_s30 + $0x20] sm:$0x7]  ;;  %v304_v13 = vld [vmem:[%s258_s30 + $0x28] sm:$0x7]  ;;  %vm322_vm4 = vcmp.eq.s32.totalorder %v887_v6, %v875_v4  ;;  %vm323_vm5 = vcmp.eq.s32.totalorder %v892_v7, %v875_v4  ;;  %v932_v17 = vld [vmem:[%s258_s30 + $0x18] sm:$0xff]  ;;  %293 = vst.msk [vmem:[%s992_s7] sm:$0xff] %vm288_vm0, %v818_v8 }
  0x15   : > { %v922_v14 = vsel %vm318_vm2, 1.0, %v818_v8  ;;  %v928_v15 = vsel %vm319_vm3, 1.0, %v818_v8  ;;  %v326_v18 = vsel %vm325_vm1, %v303_v12, -inf  ;;  %v335_v19 = vsel %vm325_vm1, %v304_v13, -inf  ;;  %296 = vst.msk [vmem:[%s1055_s10] sm:$0xff] %vm288_vm0, %v818_v8  ;;  %297 = vst.msk [vmem:[%s1055_s10 + $0x8] sm:$0xff] %vm288_vm0, %v818_v8 }
  0x16   : > { %v490_v20 = vadd.f32 %v928_v15, %v922_v14  ;;  %v327_v21 = vmax.f32 %v903_v9, %v326_v18  ;;  %v336_v22 = vmax.f32 %v905_v10, %v335_v19  ;;  %v944_v23 = vsel %vm322_vm4, 1.0, %v818_v8 }
  0x17   : > { %v950_v24 = vsel %vm323_vm5, 1.0, %v818_v8  ;;  %v496_v25 = vsel %vm325_vm1, %v944_v23, 0.0  ;;  %vm320_vm6 = vcmp.eq.s32.totalorder %v887_v6, %v908_v11  ;;  %vm321_vm7 = vcmp.eq.s32.totalorder %v892_v7, %v908_v11 }
  0x18   : > { %491 = vadd.xlane.f32.xlu0 %v490_v20  ;;  %v328_v26 = vmax.f32 %v327_v21, %v930_v16  ;;  %v337_v27 = vmax.f32 %v336_v22, %v932_v17  ;;  %v497_v28 = vsel %vm325_vm1, %v950_v24, 0.0  ;;  %v966_v29 = vsel %vm320_vm6, 1.0, %v818_v8 }
  0x19   : > { %v498_v30 = vadd.f32 %v497_v28, %v496_v25  ;;  %v972_v31 = vsel %vm321_vm7, 1.0, %v818_v8 }
  0x1a   : > { %v329_v32 = vrot.slane %v328_v26, 4  ;;  %v338_v33 = vrot.slane %v337_v27, 4  ;;  %v493_v34 = vadd.f32 %v972_v31, %v966_v29 }
  0x1b   : > { %499 = vadd.xlane.f32.xlu1 %v498_v30 }
  0x1c   : > { %v330_v35 = vmax.f32 %v328_v26, %v329_v32  ;;  %v339_v36 = vmax.f32 %v337_v27, %v338_v33  ;;  %494 = vadd.xlane.f32.xlu0 %v493_v34 }
  0x1e   : > { %v331_v37 = vrot.slane %v330_v35, 2  ;;  %v340_v38 = vrot.slane %v339_v36, 2 }
  0x20   : > { %v332_v39 = vmax.f32 %v330_v35, %v331_v37  ;;  %v341_v40 = vmax.f32 %v339_v36, %v340_v38 }
  0x22   : > { %v333_v41 = vrot.slane %v332_v39, 1  ;;  %v342_v42 = vrot.slane %v341_v40, 1 }
  0x24   : > { %v334_v43 = vmax.f32 %v332_v39, %v333_v41  ;;  %v343_v44 = vmax.f32 %v341_v40, %v342_v42 }
  0x26   : > { %v344_v45 = vsub.f32 %v903_v9, %v334_v43  ;;  %v345_v46 = vsub.f32 %v905_v10, %v343_v44  ;;  %vm433_vm8 = vcmp.eq.f32.partialorder %v303_v12, %v334_v43  ;;  %vm434_vm9 = vcmp.eq.f32.partialorder %v304_v13, %v343_v44 }
  0x27   : > { %vm429_vm10 = vcmp.eq.f32.partialorder %v903_v9, %v334_v43  ;;  %vm430_vm11 = vcmp.eq.f32.partialorder %v905_v10, %v343_v44  ;;  %v348_v49 = vsub.f32 %v303_v12, %v334_v43  ;;  %v349_v50 = vsub.f32 %v304_v13, %v343_v44 }
  0x28   : > { %v350_v47 = vmul.f32 1.442695, %v344_v45  ;;  %v352_v48 = vmul.f32 1.442695, %v345_v46  ;;  %vm431_vm12 = vcmp.eq.f32.partialorder %v930_v16, %v334_v43  ;;  %v439_v51 = vsel %vm433_vm8, %v875_v4, 19 }
  0x29   : > { %v440_v52 = vsel %vm434_vm9, %v875_v4, 19  ;;  %v346_v53 = vsub.f32 %v930_v16, %v334_v43  ;;  %vm432_vm13 = vcmp.eq.f32.partialorder %v932_v17, %v343_v44  ;;  %v358_v54 = vmul.f32 1.442695, %v348_v49 }
  0x2a   : > { %778 = vpow2.f32 %v350_v47  ;;  %v360_v55 = vmul.f32 1.442695, %v349_v50  ;;  %v435_v56 = vsel %vm429_vm10, %v863_v1, 19  ;;  %v436_v57 = vsel %vm430_vm11, %v863_v1, 19 }
  0x2b   : > { %780 = vpow2.f32 %v352_v48  ;;  %v441_v58 = vsel %vm325_vm1, %v439_v51, 2147483647  ;;  %v455_v59 = vsel %vm325_vm1, %v440_v52, 2147483647  ;;  %v347_v60 = vsub.f32 %v932_v17, %v343_v44 }
  0x2c   : > { %782 = vpow2.f32 %v358_v54  ;;  %v354_v61 = vmul.f32 1.442695, %v346_v53  ;;  %v437_v63 = vsel %vm431_vm12, %v908_v11, 19  ;;  %v438_v0 = vsel %vm432_vm13, %v908_v11, 19 }
  0x2d   : > { %784 = vpow2.f32 %v360_v55  ;;  %v356_v62 = vmul.f32 1.442695, %v347_v60  ;;  %vm442_vm14 = vcmp.lt.s32.totalorder %v435_v56, %v441_v58  ;;  %vm456_vm15 = vcmp.lt.s32.totalorder %v436_v57, %v455_v59 }
  0x2e   : > { %786 = vpow2.f32 %v354_v61  ;;  %vm291_vm8 = vcmask 2048   ;;  %v443_v9 = vsel %vm442_vm14, %v435_v56, %v441_v58  ;;  %v457_v10 = vsel %vm456_vm15, %v436_v57, %v455_v59 }
  0x2f   : > { %788 = vpow2.f32 %v356_v62  ;;  %292 = vst.msk [vmem:[%s883_s27 + $0x10] sm:$0x7] %vm291_vm8, %v818_v8  ;;  %295 = vst.msk [vmem:[%s992_s7 + $0x10] sm:$0x7] %vm291_vm8, %v818_v8  ;;  %v384_v12 = vsel %vm318_vm2, %v344_v45, 0.0  ;;  %v386_v13 = vsel %vm320_vm6, %v346_v53, 0.0  ;;  %vm444_vm9 = vcmp.lt.s32.totalorder %v443_v9, %v437_v63 }
  0x30   : > { %vm458_vm10 = vcmp.lt.s32.totalorder %v457_v10, %v438_v0  ;;  %v388_v16 = vsel %vm322_vm4, %v348_v49, 0.0  ;;  %v445_v17 = vsel %vm444_vm9, %v443_v9, %v437_v63  ;;  %v385_v19 = vsel %vm319_vm3, %v345_v46, 0.0  ;;  %298 = vst.msk [vmem:[%s1055_s10 + $0x10] sm:$0x7] %vm291_vm8, %v818_v8 }
  0x31   : > { %v459_v18 = vsel %vm458_vm10, %v457_v10, %v438_v0  ;;  %v387_v20 = vsel %vm321_vm7, %v347_v60, 0.0  ;;  %v446_v21 = vrot.slane %v445_v17, 4  ;;  %v389_v26 = vsel %vm323_vm5, %v349_v50, 0.0 }
  0x32   : > { %v460_v22 = vrot.slane %v459_v18, 4  ;;  %v390_v27 = vadd.f32 %v386_v13, %v384_v12  ;;  %v391_v30 = vsel %vm325_vm1, %v388_v16, 0.0  ;;  %v399_v33 = vadd.f32 %v387_v20, %v385_v19 }
  0x33   : > { %vm447_vm2 = vcmp.lt.s32.totalorder %v445_v17, %v446_v21  ;;  %v400_v11 = vsel %vm325_vm1, %v389_v26, 0.0  ;;  %vm324_vm13 = vcmp.ne.s32.totalorder %v877_v5, 0 }
  0x34   : > { %v779_v25 = vpop.eup %778  ;;  %vm461_vm4 = vcmp.lt.s32.totalorder %v459_v18, %v460_v22  ;;  %v448_v34 = vsel %vm447_vm2, %v445_v17, %v446_v21  ;;  %v392_v4 = vadd.f32 %v391_v30, %v390_v27  ;;  %v401_v44 = vadd.f32 %v400_v11, %v399_v33 }
  0x35   : > { %v781_v28 = vpop.eup %780  ;;  %v462_v35 = vsel %vm461_vm4, %v459_v18, %v460_v22  ;;  %v449_v37 = vrot.slane %v448_v34, 2 }
  0x36   : > { %v783_v32 = vpop.eup %782  ;;  %v463_v38 = vrot.slane %v462_v35, 2  ;;  %v393_v50 = vrot.slane %v392_v4, 4  ;;  %v402_v54 = vrot.slane %v401_v44, 4 }
  0x37   : > { %v785_v36 = vpop.eup %784  ;;  %v363_v40 = vsel %vm325_vm1, %v783_v32, 0.0  ;;  %vm450_vm3 = vcmp.lt.s32.totalorder %v448_v34, %v449_v37 }
  0x38   : > { %v787_v39 = vpop.eup %786  ;;  %vm464_vm5 = vcmp.lt.s32.totalorder %v462_v35, %v463_v38  ;;  %v372_v43 = vsel %vm325_vm1, %v785_v36, 0.0  ;;  %v451_v45 = vsel %vm450_vm3, %v448_v34, %v449_v37  ;;  %v394_v59 = vadd.f32 %v393_v50, %v392_v4 }
  0x39   : > { %v362_v41 = vadd.f32 %v787_v39, %v779_v25  ;;  %v789_v42 = vpop.eup %788  ;;  %v465_v46 = vsel %vm464_vm5, %v462_v35, %v463_v38  ;;  %v452_v49 = vrot.slane %v451_v45, 1  ;;  %v403_v9 = vadd.f32 %v402_v54, %v401_v44 }
  0x3a   : > { %v371_v48 = vadd.f32 %v789_v42, %v781_v28  ;;  %v466_v51 = vrot.slane %v465_v46, 1  ;;  %v395_v22 = vrot.slane %v394_v59, 2  ;;  %v819_v39 = vmov 1966171168  }
  0x3b   : > { %v364_v47 = vadd.f32 %v363_v40, %v362_v41  ;;  %vm453_vm6 = vcmp.lt.s32.totalorder %v451_v45, %v452_v49  ;;  %v404_v33 = vrot.slane %v403_v9, 2  ;;  %v414_v40 = vunpack.c.l.s4 %v819_v39 }
  0x3c   : > { %v373_v53 = vadd.f32 %v372_v43, %v371_v48  ;;  %v454_v55 = vsel %vm453_vm6, %v451_v45, %v452_v49  ;;  %vm467_vm7 = vcmp.lt.s32.totalorder %v465_v46, %v466_v51  ;;  %v396_v36 = vadd.f32 %v395_v22, %v394_v59 }
  0x3d   : > { %v365_v52 = vrot.slane %v364_v47, 4  ;;  %v468_v58 = vsel %vm467_vm7, %v465_v46, %v466_v51  ;;  %vm469_vm11 = vcmp.ne.s32.totalorder %v454_v55, %v887_v6  ;;  %v405_v11 = vadd.f32 %v404_v33, %v403_v9  ;;  %v510_v9 = vld [vmem:[%s992_s7 + $0x8] sm:$0xff] }
  0x3e   : > { %v374_v57 = vrot.slane %v373_v53, 4  ;;  %vm470_vm12 = vcmp.ne.s32.totalorder %v468_v58, %v892_v7  ;;  %v740_v60 = vsel %vm469_vm11, 1.0, %v818_v8  ;;  %v397_v37 = vrot.slane %v396_v36, 1 }
  0x3f   : > { %v366_v56 = vadd.f32 %v365_v52, %v364_v47  ;;  %v741_v63 = vsel %vm470_vm12, 1.0, %v818_v8  ;;  %v515_v0 = vrot.slane %v740_v60, %v868_v2  ;;  %v406_v38 = vrot.slane %v405_v11, 1 }
  0x40   : > { %v375_v62 = vadd.f32 %v374_v57, %v373_v53  ;;  %v519_v10 = vrot.slane %v741_v63, %v868_v2  ;;  %v398_v4 = vadd.f32 %v397_v37, %v396_v36  ;;  %v415_v44 = vunpack.c.0.s8 %v414_v40 }
  0x41   : > { %v367_v61 = vrot.slane %v366_v56, 2  ;;  %v522_v16 = vmul.f32 %v966_v29, %v515_v0  ;;  %v520_v6 = vmul.f32 %v922_v14, %v515_v0  ;;  %v524_v18 = vmul.f32 %v944_v23, %v515_v0 }
  0x42   : > { %v376_v13 = vrot.slane %v375_v62, 2  ;;  %v523_v17 = vmul.f32 %v972_v31, %v519_v10  ;;  %v521_v7 = vmul.f32 %v928_v15, %v519_v10  ;;  %v525_v19 = vmul.f32 %v950_v24, %v519_v10  ;;  %v509_v10 = vld [vmem:[%s992_s7] sm:$0xff] }
  0x43   : > { %v368_v12 = vadd.f32 %v367_v61, %v366_v56  ;;  %v532_v27 = vsel %vm325_vm1, %v524_v18, 0.0  ;;  %v407_v43 = vadd.f32 %v406_v38, %v405_v11  ;;  %v418_v49 = vsub.s32 %v415_v44, %v863_v1 }
  0x44   : > { %v377_v21 = vadd.f32 %v376_v13, %v375_v62  ;;  %v529_v25 = vadd.f32 %v523_v17, %v522_v16  ;;  %v526_v26 = vadd.f32 %v521_v7, %v520_v6  ;;  %v533_v28 = vsel %vm325_vm1, %v525_v19, 0.0  ;;  %v511_v17 = vld [vmem:[%s992_s7 + $0x10] sm:$0x7]  ;;  %v543_v19 = vld [vmem:[%s1055_s10] sm:$0xff] }
  0x45   : > { %v369_v20 = vrot.slane %v368_v12, 1  ;;  %v534_v34 = vadd.f32 %v533_v28, %v532_v27  ;;  %v545_v27 = vld [vmem:[%s1055_s10 + $0x10] sm:$0x7] }
  0x46   : > { %v378_v32 = vrot.slane %v377_v21, 1  ;;  %530 = vadd.xlane.f32.xlu0 %v529_v25  ;;  %527 = vadd.xlane.f32.xlu1 %v526_v26 }
  0x47   : > { %v370_v30 = vadd.f32 %v369_v20, %v368_v12  ;;  %v544_v20 = vld [vmem:[%s1055_s10 + $0x8] sm:$0xff] }
  0x48   : > { %v379_v35 = vadd.f32 %v378_v32, %v377_v21 }
  0x49   : > { %790 = vlog2.f32 %v370_v30 }
  0x4a   : > { %792 = vlog2.f32 %v379_v35  ;;  %535 = vadd.xlane.f32.xlu1 %v534_v34 }
  0x53   : > { %v791_v41 = vpop.eup %790 }
  0x54   : > { %v381_v42 = vmul.f32 0.6931472, %v791_v41  ;;  %v793_v45 = vpop.eup %792 }
  0x55   : > { %v383_v46 = vmul.f32 0.6931472, %v793_v45 }
  0x56   : > { %v408_v47 = vsub.f32 %v381_v42, %v398_v4 }
  0x57   : > { %v409_v48 = vsub.f32 %v383_v46, %v407_v43 }
  0x59   : > { %v412_v50 = vcombine.low %v408_v47, %v409_v48 }
  0x5b   : > { %v419_v51 = vrot.slane %v412_v50, %v418_v49 }
  0x5d   : > { %v426_v52 = vrot.slane %v419_v51, %v418_v49 }
  0x5f   : > { %v428_v53 = vsel %vm324_vm13, %v426_v52, 0.0 }
  0x60   : > { %v550_v54 = vrot.slane %v428_v53, %v868_v2  ;;  %v554_v55 = vrot.slane %v428_v53, %v316_v3 }
  0x62   : > { %v557_v56 = vmul.f32 %v922_v14, %v550_v54  ;;  %v558_v5 = vmul.f32 %v928_v15, %v554_v55  ;;  %v559_v57 = vmul.f32 %v966_v29, %v550_v54  ;;  %v560_v58 = vmul.f32 %v972_v31, %v554_v55  ;;  %v487_v15 = vld [vmem:[%s883_s27] sm:$0xff] }
  0x63   : > { %v561_v8 = vmul.f32 %v944_v23, %v550_v54  ;;  %v562_v59 = vmul.f32 %v950_v24, %v554_v55  ;;  %v489_v23 = vld [vmem:[%s883_s27 + $0x10] sm:$0x7]  ;;  %v488_v24 = vld [vmem:[%s883_s27 + $0x8] sm:$0xff] }
  0x64   : > { %v563_v2 = vadd.f32 %v558_v5, %v557_v56  ;;  %v566_v60 = vadd.f32 %v560_v58, %v559_v57 }
  0x65   : > { %v569_v1 = vsel %vm325_vm1, %v561_v8, 0.0  ;;  %v570_v3 = vsel %vm325_vm1, %v562_v59, 0.0 }
  0x66   : > { %564 = vadd.xlane.f32.xlu0 %v563_v2  ;;  %567 = vadd.xlane.f32.xlu1 %v566_v60  ;;  %v571_v14 = vadd.f32 %v570_v3, %v569_v1 }
  0x6a   : > { %572 = vadd.xlane.f32.xlu0 %v571_v14 }
  0xa5   : > { %v492_v29 = vpop.xlane.xlu0 %491 }
  0xa6   : > { %v501_v31 = vadd.f32 %v492_v29, %v487_v15 }
  0xa8   : > { %505 = vst.msk [vmem:[%s883_s27] sm:$0xff] %vm288_vm0, %v501_v31  ;;  %v500_v61 = vpop.xlane.xlu1 %499 }
  0xa9   : > { %v503_v62 = vadd.f32 %v500_v61, %v489_v23  ;;  %v495_v63 = vpop.xlane.xlu0 %494 }
  0xaa   : > { %v502_v0 = vadd.f32 %v495_v63, %v488_v24 }
  0xab   : > { %508 = vst.msk [vmem:[%s883_s27 + $0x10] sm:$0x7] %vm291_vm8, %v503_v62 }
  0xac   : > { %506 = vst.msk [vmem:[%s883_s27 + $0x8] sm:$0xff] %vm288_vm0, %v502_v0 }
  0xd3   : > { %v531_v12 = vpop.xlane.xlu0 %530  ;;  %v528_v13 = vpop.xlane.xlu1 %527 }
  0xd4   : > { %v538_v16 = vadd.f32 %v531_v12, %v510_v9  ;;  %v537_v6 = vadd.f32 %v528_v13, %v509_v10 }
  0xd6   : > { %541 = vst.msk [vmem:[%s992_s7 + $0x8] sm:$0xff] %vm288_vm0, %v538_v16  ;;  %540 = vst.msk [vmem:[%s992_s7] sm:$0xff] %vm288_vm0, %v537_v6 }
  0xd7   : > { %v536_v7 = vpop.xlane.xlu1 %535 }
  0xd8   : > { %v539_v18 = vadd.f32 %v536_v7, %v511_v17 }
  0xda   : > { %542 = vst.msk [vmem:[%s992_s7 + $0x10] sm:$0x7] %vm291_vm8, %v539_v18 }
  0xf3   : > { %v565_v21 = vpop.xlane.xlu0 %564  ;;  %v568_v22 = vpop.xlane.xlu1 %567 }
  0xf4   : > { %v574_v25 = vadd.f32 %v565_v21, %v543_v19  ;;  %v575_v26 = vadd.f32 %v568_v22, %v544_v20 }
  0xf6   : > { %577 = vst.msk [vmem:[%s1055_s10] sm:$0xff] %vm288_vm0, %v574_v25  ;;  %578 = vst.msk [vmem:[%s1055_s10 + $0x8] sm:$0xff] %vm288_vm0, %v575_v26 }
  0xf7   : > { %v573_v28 = vpop.xlane.xlu0 %572 }
  0xf8   : > { %v576_v30 = vadd.f32 %v573_v28, %v545_v27 }
  0xfa   : > { %579 = vst.msk [vmem:[%s1055_s10 + $0x10] sm:$0x7] %vm291_vm8, %v576_v30 }
  0xfb PF: > { %s15_s17 = sadd.s32 1, %s816_s17   ;;  %s1119_s15 = smov %s812_s16 }
  0xfc   : > { %p12_p5 = scmp.ge.s32.totalorder %s15_s17, 4   ;;  %s1120_s16 = smov %s1122_s18 }
  0xfe   :  { %14 = sbr.rel (!%p12_p5) target bundleno = 2 (0x2), region = 89 }

</bundles_post_ra>
